<compile_context>
chip_gen: v6e
topology: v6e:2x2x1
jax: 0.10.0
libtpu: 0.0.40
codegen_flags: <defaults>
</compile_context>

<pallas_src>
import jax
import jax.numpy as jnp
from jax.experimental import pallas as pl
from jax.experimental.pallas import tpu as pltpu


def _make_wce_kernel(n_rows):
    """Build the kernel with the true (unpadded) row count baked in as a constant."""

    def kernel(logits_ref, targets_ref, wt_ref, num_ref, den_ref):
        tile_n, c = logits_ref.shape
        xn = logits_ref[...]                               # (TN, C) native dtype (bf16/f32)
        x = xn.astype(jnp.float32)                         # f32 for the LSE math
        t = targets_ref[...]                               # (TN, 1) int32
        w_t = wt_ref[...]                                  # (TN, 1) f32 (pre-gathered)

        # Valid-row mask: handles the ragged last tile without any HBM padding copy.
        row0 = pl.program_id(0) * tile_n
        row_ids = row0 + jax.lax.broadcasted_iota(jnp.int32, (tile_n, 1), 0)
        row_ok = row_ids < n_rows                          # (TN, 1) bool

        # Target-class mask from a (1, C) iota broadcast against (TN, 1) targets
        # (no full-tile i32 intermediate).
        cls = jax.lax.broadcasted_iota(jnp.int32, (1, c), 1)
        mask = cls == t                                    # (TN, C) bool

        # Target logit: select on the native-dtype tile (exact for a one-hot),
        # upcast only the (TN, 1) lane-reduce result.
        x_t = jnp.sum(jnp.where(mask, xn, jnp.zeros_like(xn)),
                      axis=-1, keepdims=True).astype(jnp.float32)   # (TN, 1)

        # Numerically-stable log-sum-exp along the class (lane) axis in f32.
        m = jnp.max(x, axis=-1, keepdims=True)             # (TN, 1)
        lse = m + jnp.log(jnp.sum(jnp.exp(x - m), axis=-1, keepdims=True))
        # TODO(synk): if the bundle dump shows XLU lane-reduce saturation on v7x, offload
        #             the sum-of-exp to the idle MXU via exp_tile @ ones((C, 1), f32).

        num_rows = jnp.where(row_ok, -w_t * (x_t - lse), 0.0)       # (TN, 1)
        den_rows = jnp.where(row_ok, w_t, 0.0)                      # (TN, 1)

        # Per-tile partial sums, broadcast across 128 lanes -> unmasked full-block store.
        num_ref[...] = jnp.broadcast_to(jnp.sum(num_rows, keepdims=True), (1, 128))
        den_ref[...] = jnp.broadcast_to(jnp.sum(den_rows, keepdims=True), (1, 128))

    return kernel


def _vmem_bytes_per_row(C, logit_itemsize):
    """Approximate VMEM bytes per logits row: lane-padded block (double-buffered) +
    ~3 live f32 full-width intermediates + the (TN,1) targets/w_t blocks (lane-padded)."""
    c_pad = ((C + 127) // 128) * 128
    return (2 * logit_itemsize * c_pad) + (3 * 4 * c_pad) + (2 * 2 * 128 * 4)


def _pick_tile_n(N, C, logit_itemsize, *, target_logit_bytes=4 << 20,
                 vmem_budget_bytes=40 << 20):
    """Row tile: ~4 MiB of (lane-padded) logits per block, capped by a VMEM budget that
    accounts for double buffering + f32 intermediates, multiple of 8 rows, and >= 2 tiles
    when N allows (pipelining / dual-TC sharding on v7x)."""
    c_pad = ((C + 127) // 128) * 128
    per_row = _vmem_bytes_per_row(C, logit_itemsize)
    rows = min(max(8, vmem_budget_bytes // per_row),
               max(8, target_logit_bytes // (logit_itemsize * c_pad)))
    if N >= 16:
        rows = min(rows, ((pl.cdiv(N, 2) + 7) // 8) * 8)   # keep at least 2 grid steps
    rows = min(rows, ((N + 7) // 8) * 8)
    return max(8, (rows // 8) * 8)


def weighted_cross_entropy_loss(logits, targets, class_weights, *, tile_n=None,
                                vmem_limit_bytes=None):
    """Pallas implementation of nn.CrossEntropyLoss(weight=class_weights)(logits, targets).

    Pass `logits` in the model's native dtype (bf16 is fine); the kernel upcasts to f32
    internally, so pre-casting to f32 only wastes HBM bandwidth.
    """
    N, C = logits.shape
    itemsize = jnp.dtype(logits.dtype).itemsize
    if tile_n is None:
        tile_n = _pick_tile_n(N, C, itemsize)
    assert tile_n % 8 == 0, "row tile must be a multiple of 8"

    n_tiles = pl.cdiv(N, tile_n)

    t_i32 = targets.astype(jnp.int32)
    t2 = t_i32.reshape(N, 1)
    # Per-row class weight gathered once by XLA (cheap (N,)-sized gather) so the kernel
    # skips the (1,C) weight broadcast + select + lane-reduce entirely.
    w_t = class_weights.astype(jnp.float32)[t_i32].reshape(N, 1)

    if vmem_limit_bytes is None:
        est = tile_n * _vmem_bytes_per_row(C, itemsize) + (2 << 20)
        vmem_limit_bytes = int(min(64 << 20, max(32 << 20, est)))

    kernel = _make_wce_kernel(N)

    # TODO(synk): sweep pipeline_mode=pl.Buffered(3) on the logits BlockSpec for v7x if
    #             the trace shows exposed copy-in gaps and VMEM headroom remains.
    num, den = pl.pallas_call(
        kernel,
        out_shape=(
            jax.ShapeDtypeStruct((1, n_tiles * 128), jnp.float32),
            jax.ShapeDtypeStruct((1, n_tiles * 128), jnp.float32),
        ),
        grid_spec=pltpu.PrefetchScalarGridSpec(
            num_scalar_prefetch=0,
            grid=(n_tiles,),
            in_specs=[
                pl.BlockSpec((tile_n, C), lambda i: (i, 0)),   # logits tile (ragged last tile OK)
                pl.BlockSpec((tile_n, 1), lambda i: (i, 0)),   # targets tile
                pl.BlockSpec((tile_n, 1), lambda i: (i, 0)),   # per-row class weight tile
            ],
            out_specs=[
                pl.BlockSpec((1, 128), lambda i: (0, i)),      # per-tile sum(-w_t*logp_t), lane-dense
                pl.BlockSpec((1, 128), lambda i: (0, i)),      # per-tile sum(w_t), lane-dense
            ],
        ),
        compiler_params=pltpu.CompilerParams(
            dimension_semantics=("parallel",),
            vmem_limit_bytes=vmem_limit_bytes,
        ),
    )(logits, t2, w_t)

    # Lane 0 of each (1,128) block carries the tile's partial sum; final reduce in JAX.
    num_parts = num.reshape(n_tiles, 128)[:, 0]
    den_parts = den.reshape(n_tiles, 128)[:, 0]
    # TODO(synk): PyTorch raises for out-of-range targets and supports ignore_index;
    #             invalid targets here silently contribute ~0 to num and a clamped weight to den.
    return jnp.sum(num_parts) / jnp.sum(den_parts)


def _reference(logits, targets, class_weights):
    logp = jax.nn.log_softmax(logits.astype(jnp.float32), axis=-1)
    picked = jnp.take_along_axis(logp, targets[:, None].astype(jnp.int32), axis=-1)[:, 0]
    w_t = class_weights.astype(jnp.float32)[targets]
    return jnp.sum(-w_t * picked) / jnp.sum(w_t)


if __name__ == "__main__":
    key = jax.random.PRNGKey(0)
    k1, k2, k3, k4, k5, k6 = jax.random.split(key, 6)

    # Test 1: module-spec shapes (batch=8, classes=4), f32 logits, single tile.
    N, C = 8, 4
    logits = jax.random.normal(k1, (N, C), dtype=jnp.float32)
    targets = jax.random.randint(k2, (N,), 0, C, dtype=jnp.int32)
    class_weights = jnp.array([1.0, 2.0, 0.5, 1.5], dtype=jnp.float32)

    loss = jax.block_until_ready(weighted_cross_entropy_loss(logits, targets, class_weights))
    ref = _reference(logits, targets, class_weights)
    assert jnp.allclose(loss, ref, atol=1e-5, rtol=1e-5), (loss, ref)

    # Test 2: multi-tile grid with a ragged last tile (no HBM padding copy), f32 logits.
    N2, C2 = 20, 12
    logits2 = jax.random.normal(k3, (N2, C2), dtype=jnp.float32)
    targets2 = jax.random.randint(k4, (N2,), 0, C2, dtype=jnp.int32)
    w2 = jnp.linspace(0.5, 2.0, C2, dtype=jnp.float32)

    loss2 = jax.block_until_ready(
        weighted_cross_entropy_loss(logits2, targets2, w2, tile_n=8))
    ref2 = _reference(logits2, targets2, w2)
    assert jnp.allclose(loss2, ref2, atol=1e-5, rtol=1e-5), (loss2, ref2)

    # Test 3: bf16 logits streamed in native dtype (f32 math in-kernel), ragged last tile.
    N3, C3 = 24, 16
    logits3 = jax.random.normal(k5, (N3, C3), dtype=jnp.float32).astype(jnp.bfloat16)
    targets3 = jax.random.randint(k6, (N3,), 0, C3, dtype=jnp.int32)
    w3 = jnp.linspace(0.25, 1.75, C3, dtype=jnp.float32)

    loss3 = jax.block_until_ready(
        weighted_cross_entropy_loss(logits3, targets3, w3, tile_n=16))
    ref3 = _reference(logits3, targets3, w3)
    assert jnp.allclose(loss3, ref3, atol=1e-4, rtol=1e-4), (loss3, ref3)

    print("KERNEL_OK")
</pallas_src>

<mosaic_0001>
module attributes {stable_mosaic.version = 11 : i64} {
  func.func @kernel(%arg0: i32, %arg1: memref<8x4xf32, #tpu.memory_space<vmem>>, %arg2: memref<8x1xi32, #tpu.memory_space<vmem>>, %arg3: memref<8x1xf32, #tpu.memory_space<vmem>>, %arg4: memref<1x128xf32, #tpu.memory_space<vmem>>, %arg5: memref<1x128xf32, #tpu.memory_space<vmem>>) attributes {dimension_semantics = [#tpu.dimension_semantics<parallel>], iteration_bounds = array<i64: 1>, scalar_prefetch = 0 : i64, scratch_operands = 0 : i64, tpu.core_type = #tpu.core_type<tc>, window_params = [{transform_indices = @transform_0, window_bounds = array<i64: 8, 4>}, {transform_indices = @transform_1, window_bounds = array<i64: 8, 1>}, {transform_indices = @transform_2, window_bounds = array<i64: 8, 1>}, {transform_indices = @transform_3, window_bounds = array<i64: 1, 128>}, {transform_indices = @transform_4, window_bounds = array<i64: 1, 128>}]} {
    %c0 = arith.constant 0 : index
    %c0_0 = arith.constant 0 : index
    %0 = vector.load %arg1[%c0, %c0_0] : memref<8x4xf32, #tpu.memory_space<vmem>>, vector<8x4xf32>
    %c0_1 = arith.constant 0 : index
    %c0_2 = arith.constant 0 : index
    %1 = vector.load %arg2[%c0_1, %c0_2] : memref<8x1xi32, #tpu.memory_space<vmem>>, vector<8x1xi32>
    %c0_3 = arith.constant 0 : index
    %c0_4 = arith.constant 0 : index
    %2 = vector.load %arg3[%c0_3, %c0_4] : memref<8x1xf32, #tpu.memory_space<vmem>>, vector<8x1xf32>
    %c8_i32 = arith.constant 8 : i32
    %3 = arith.muli %arg0, %c8_i32 : i32
    %4 = tpu.iota {dimensions = array<i32: 0>} : vector<8x1xi32>
    %5 = vector.broadcast %3 : i32 to vector<8x1xi32>
    %6 = arith.addi %5, %4 : vector<8x1xi32>
    %c8_i32_5 = arith.constant 8 : i32
    %7 = vector.broadcast %c8_i32_5 : i32 to vector<8x1xi32>
    %8 = arith.cmpi slt, %6, %7 : vector<8x1xi32>
    %9 = tpu.iota {dimensions = array<i32: 1>} : vector<1x4xi32>
    %10 = vector.broadcast %9 : vector<1x4xi32> to vector<8x4xi32>
    %11 = vector.broadcast %1 : vector<8x1xi32> to vector<8x4xi32>
    %12 = arith.cmpi eq, %10, %11 : vector<8x4xi32>
    %cst = arith.constant 0.000000e+00 : f32
    %13 = vector.broadcast %cst : f32 to vector<8x4xf32>
    %14 = arith.select %12, %0, %13 : vector<8x4xi1>, vector<8x4xf32>
    %cst_6 = arith.constant dense<0.000000e+00> : vector<8xf32>
    %15 = vector.multi_reduction <add>, %14, %cst_6 [1] : vector<8x4xf32> to vector<8xf32>
    %16 = vector.shape_cast %15 : vector<8xf32> to vector<8x1xf32>
    %cst_7 = arith.constant dense<0xFF800000> : vector<8xf32>
    %17 = vector.multi_reduction <maximumf>, %0, %cst_7 [1] : vector<8x4xf32> to vector<8xf32>
    %18 = vector.shape_cast %17 : vector<8xf32> to vector<8x1xf32>
    %19 = vector.broadcast %18 : vector<8x1xf32> to vector<8x4xf32>
    %20 = arith.subf %0, %19 : vector<8x4xf32>
    %21 = math.exp %20 : vector<8x4xf32>
    %cst_8 = arith.constant dense<0.000000e+00> : vector<8xf32>
    %22 = vector.multi_reduction <add>, %21, %cst_8 [1] : vector<8x4xf32> to vector<8xf32>
    %23 = vector.shape_cast %22 : vector<8xf32> to vector<8x1xf32>
    %24 = math.log %23 : vector<8x1xf32>
    %25 = arith.addf %18, %24 : vector<8x1xf32>
    %cst_9 = arith.constant 0.000000e+00 : f32
    %26 = vector.broadcast %cst_9 : f32 to vector<8x1xf32>
    %27 = arith.subf %26, %2 : vector<8x1xf32>
    %28 = arith.subf %16, %25 : vector<8x1xf32>
    %29 = arith.mulf %27, %28 : vector<8x1xf32>
    %cst_10 = arith.constant 0.000000e+00 : f32
    %30 = vector.broadcast %cst_10 : f32 to vector<8x1xf32>
    %31 = arith.select %8, %29, %30 : vector<8x1xi1>, vector<8x1xf32>
    %cst_11 = arith.constant 0.000000e+00 : f32
    %32 = vector.broadcast %cst_11 : f32 to vector<8x1xf32>
    %33 = arith.select %8, %2, %32 : vector<8x1xi1>, vector<8x1xf32>
    %34 = vector.shape_cast %31 : vector<8x1xf32> to vector<1x8x1xf32>
    %cst_12 = arith.constant dense<0.000000e+00> : vector<1xf32>
    %35 = vector.multi_reduction <add>, %34, %cst_12 [1, 2] : vector<1x8x1xf32> to vector<1xf32>
    %36 = vector.shape_cast %35 : vector<1xf32> to vector<1x1x1xf32>
    %37 = vector.extract %36[0, 0, 0] : f32 from vector<1x1x1xf32>
    %38 = vector.broadcast %37 : f32 to vector<1x1xf32>
    %39 = vector.shape_cast %38 : vector<1x1xf32> to vector<1x1xf32>
    %40 = vector.broadcast %39 : vector<1x1xf32> to vector<1x128xf32>
    %c0_13 = arith.constant 0 : index
    %c0_14 = arith.constant 0 : index
    %41 = vector.load %arg4[%c0_13, %c0_14] : memref<1x128xf32, #tpu.memory_space<vmem>>, vector<1x128xf32>
    tpu.vector_store %arg4[%c0_13, %c0_14], %40 {strides = array<i32>} : memref<1x128xf32, #tpu.memory_space<vmem>>, vector<1x128xf32>,
    %42 = vector.shape_cast %33 : vector<8x1xf32> to vector<1x8x1xf32>
    %cst_15 = arith.constant dense<0.000000e+00> : vector<1xf32>
    %43 = vector.multi_reduction <add>, %42, %cst_15 [1, 2] : vector<1x8x1xf32> to vector<1xf32>
    %44 = vector.shape_cast %43 : vector<1xf32> to vector<1x1x1xf32>
    %45 = vector.extract %44[0, 0, 0] : f32 from vector<1x1x1xf32>
    %46 = vector.broadcast %45 : f32 to vector<1x1xf32>
    %47 = vector.shape_cast %46 : vector<1x1xf32> to vector<1x1xf32>
    %48 = vector.broadcast %47 : vector<1x1xf32> to vector<1x128xf32>
    %c0_16 = arith.constant 0 : index
    %c0_17 = arith.constant 0 : index
    %49 = vector.load %arg5[%c0_16, %c0_17] : memref<1x128xf32, #tpu.memory_space<vmem>>, vector<1x128xf32>
    tpu.vector_store %arg5[%c0_16, %c0_17], %48 {strides = array<i32>} : memref<1x128xf32, #tpu.memory_space<vmem>>, vector<1x128xf32>,
    return
  }
  func.func @transform_0(%arg0: i32) -> (i32, i32) {
    %c0_i32 = arith.constant 0 : i32
    %c0_i32_0 = arith.constant 0 : i32
    return %arg0, %c0_i32 : i32, i32
  }
  func.func @transform_1(%arg0: i32) -> (i32, i32) {
    %c0_i32 = arith.constant 0 : i32
    %c0_i32_0 = arith.constant 0 : i32
    return %arg0, %c0_i32 : i32, i32
  }
  func.func @transform_2(%arg0: i32) -> (i32, i32) {
    %c0_i32 = arith.constant 0 : i32
    %c0_i32_0 = arith.constant 0 : i32
    return %arg0, %c0_i32 : i32, i32
  }
  func.func @transform_3(%arg0: i32) -> (i32, i32) {
    %c0_i32 = arith.constant 0 : i32
    %c0_i32_0 = arith.constant 0 : i32
    return %c0_i32, %arg0 : i32, i32
  }
  func.func @transform_4(%arg0: i32) -> (i32, i32) {
    %c0_i32 = arith.constant 0 : i32
    %c0_i32_0 = arith.constant 0 : i32
    return %c0_i32, %arg0 : i32, i32
  }
}

</mosaic_0001>

<bundles_post_ra>
// kernel: tpu_custom_call.1
= control target key start
LH: loop header
LB: loop body
LE: loop exit
PB: predicated region body
PF: predicated region fallthrough
CT: control target
= control target key end

     0   :  { %10 = vsyncpa [#allocation3], 0  ;;  %vm34_vm0 = vcmask 31744   ;;  %s210_s0 = inlined_call_operand.vmem [shape: f32[8,4], index: 0, kind: input, shape index: {}]   ;;  %s211_s1 = inlined_call_operand.vmem [shape: s32[8,1], index: 1, kind: input, shape index: {}]   ;;  %s212_s2 = inlined_call_operand.vmem [shape: f32[8,1], index: 2, kind: input, shape index: {}]   ;;  %s213_s3 = inlined_call_operand.hbm [shape: f32[1,128], index: 3, kind: output, shape index: {0}]   ;;  %s214_s4 = inlined_call_operand.hbm [shape: f32[1,128], index: 4, kind: output, shape index: {1}]  }
   0x1   :  { %v18_v0 = vld [vmem:[%s210_s0] sm:$0xff] }
   0x2   :  { %11 = vsyncpa [#allocation5], 0  ;;  %v38_v1 = vsel %vm34_vm0, %v18_v0, -inf  ;;  %v164_v2 = vmov 0   ;;  %v19_v3 = vld [vmem:[%s211_s1] sm:$0xff]  ;;  %v27_v7 = vlaneseq  ;;  %vm55_vm2 = vcmask 7168  }
   0x3   :  { %115 = vset.pattern.permute.xlu0 %v164_v2  ;;  %v20_v16 = vld [vmem:[%s212_s2] sm:$0xff]  ;;  %s165_s2 = smov [#allocation2]   ;;  %s166_s21 = smov [#allocation4]  }
   0x4   :  { %39 = vmax.xlane.f32.xlu0 %v38_v1  ;;  %v28_v8 = vand.u32 127, %v27_v7  ;;  %v50_v20 = vsub.f32 0.0, %v20_v16  ;;  %v68_v24 = vsel %vm55_vm2, %v20_v16, 0.0  ;;  %s86_s19 = sshll.u32 %s165_s2, 4  ;;  %s96_s22 = sshll.u32 %s166_s21, 4  ;;  %s87_s19 = int_to_ptr.vmem [resolvable:$true] %s86_s19  ;;  %s97_s22 = int_to_ptr.vmem [resolvable:$true] %s96_s22 }
   0x5   :  { %s120_s23 = scalar_lea.vmem %s87_s19, 16  ;;  %s124_s24 = scalar_lea.vmem %s87_s19, 32 }
   0x6   :  { %p121_p0 = scmp.ne.s32.totalorder %s87_s19, %s120_s23  ;;  %p125_p1 = scmp.lt.s32.totalorder %s87_s19, %s87_s19 }
   0x7   :  { %p126_p2 = scmp.lt.s32.totalorder %s124_s24, %s120_s23 }
   0x9   :  { %p127_p3 = por %p126_p2, %p125_p1 }
   0xb   :  { %p128_p4 = pnand %p127_p3, %p121_p0 }
  0x1a   :  { %30 = vperm.xlu0 %115, %v19_v3  }
  0x8d   :  { %v40_v4 = vpop.xlane.xlu0 %39 }
  0x8e   :  { %v41_v5 = vsub.f32 %v18_v0, %v40_v4 }
  0x90   :  { %v42_v6 = vmul.f32 1.442695, %v41_v5 }
  0x92   :  { %116 = vpow2.f32 %v42_v6 }
  0x95   :  { %v31_v9 = vpop.permute.xlu0 %30 }
  0x96   :  { %vm32_vm1 = vcmp.eq.s32.totalorder %v28_v8, %v31_v9 }
  0x97   :  { %v33_v11 = vsel %vm32_vm1, %v18_v0, 0.0 }
  0x98   :  { %v35_v13 = vsel %vm34_vm0, %v33_v11, 0.0 }
  0x9f   :  { %v117_v10 = vpop.eup %116 }
  0xa0   :  { %v44_v12 = vsel %vm34_vm0, %v117_v10, 0.0 }
  0xa1   :  { %45 = vadd.xlane.f32.xlu1 %v44_v12 }
  0xa5   :  { %36 = vadd.xlane.f32.xlu1 %v35_v13 }
 0x12a   :  { %v46_v14 = vpop.xlane.xlu1 %45 }
 0x12b   :  { %118 = vlog2.f32 %v46_v14 }
 0x12e   :  { %v37_v18 = vpop.xlane.xlu1 %36 }
 0x138   :  { %v119_v15 = vpop.eup %118 }
 0x139   :  { %v48_v17 = vmul.f32 0.6931472, %v119_v15 }
 0x13b   :  { %v49_v19 = vadd.f32 %v48_v17, %v40_v4 }
 0x13d   :  { %v51_v21 = vsub.f32 %v37_v18, %v49_v19 }
 0x13f   :  { %v52_v22 = vmul.f32 %v51_v21, %v50_v20 }
 0x141   :  { %v56_v23 = vsel %vm55_vm2, %v52_v22, 0.0 }
 0x142   :  { %57 = vadd.xlane.f32.xlu1 %v56_v23 }
 0x146   :  { %69 = vadd.xlane.f32.xlu1 %v68_v24 }
 0x1cb   :  { %v58_v25 = vpop.xlane.xlu1 %57 }
 0x1cc   :  { %v59_v26 = vrot.slane %v58_v25, 4 }
 0x1ce   :  { %v60_v27 = vadd.f32 %v59_v26, %v58_v25 }
 0x1cf   :  { %v70_v28 = vpop.xlane.xlu1 %69 }
 0x1d0   :  { %v61_v29 = vrot.slane %v60_v27, 2  ;;  %v71_v30 = vrot.slane %v70_v28, 4 }
 0x1d2   :  { %v72_v31 = vadd.f32 %v71_v30, %v70_v28  ;;  %v62_v32 = vadd.f32 %v61_v29, %v60_v27 }
 0x1d4   :  { %v73_v33 = vrot.slane %v72_v31, 2  ;;  %v63_v34 = vrot.slane %v62_v32, 1 }
 0x1d6   :  { %v74_v35 = vadd.f32 %v73_v33, %v72_v31  ;;  %v64_v36 = vadd.f32 %v63_v34, %v62_v32 }
 0x1d8   :  { %108 = vpush %v64_v36  ;;  %v75_v37 = vrot.slane %v74_v35, 1 }
 0x1da   :  { %v76_v38 = vadd.f32 %v75_v37, %v74_v35 }
 0x1dc   :  { %110 = vpush %v76_v38 }
 0x209   :  { %s109_s20 = spop %108 }
 0x20a   :  { %v66_v39 = vstv %s109_s20 }
 0x20b   :  { %67 = vst [vmem:[#allocation2] sm:$0x1] %v66_v39 }
 0x20c   :  { %131 = shalt.err (!%p128_p4)
}
 0x20d   :  { %89 = dma.vmem_to_hbm [thread:$0]  %s87_s19, 16, %s213_s3, [#allocation3]  }
 0x20e   :  { %s111_s27 = spop %110  ;;  %s140_s28 = scalar_lea.vmem %s97_s22, 16 }
 0x20f   :  { %v78_v40 = vstv %s111_s27  ;;  %p141_p5 = scmp.ne.s32.totalorder %s97_s22, %s140_s28  ;;  %s144_s29 = scalar_lea.vmem %s97_s22, 32 }
 0x210   :  { %79 = vst [vmem:[#allocation4] sm:$0x1] %v78_v40  ;;  %p145_p6 = scmp.lt.s32.totalorder %s97_s22, %s97_s22  ;;  %p146_p7 = scmp.lt.s32.totalorder %s144_s29, %s140_s28 }
 0x212   :  { %p147_p8 = por %p146_p7, %p145_p6 }
 0x214   :  { %p148_p9 = pnand %p147_p8, %p141_p5 }
 0x216   :  { %151 = shalt.err (!%p148_p9)
}
 0x217   :  { %99 = dma.vmem_to_hbm [thread:$0]  %s97_s22, 16, %s214_s4, [#allocation5]  }
 0x218   :  { %160 = dma.done.wait [#allocation3], 16  }
 0x219   :  { %161 = vsyncadd [#allocation3], 4294967280 }
 0x21a   :  { %162 = dma.done.wait [#allocation5], 16  }
 0x21b   :  { %163 = vsyncadd [#allocation5], 4294967280 }
 0x21c   :  { %106 = vsyncpa [#allocation3], 1 }
 0x21d   :  { %107 = vsyncpa [#allocation5], 1 }

</bundles_post_ra>
